<compile_context>
chip_gen: v5e
topology: v5e:2x2
jax: 0.10.0
libtpu: 0.0.40
codegen_flags: <defaults>
</compile_context>

<pallas_src>
import functools

import jax
import jax.numpy as jnp
from jax.experimental import pallas as pl
from jax.experimental.pallas import tpu as pltpu


def _round_up(x, m):
    return (x + m - 1) // m * m


def _pick_batch_block(n):
    """Largest B in {8,4,2,1} dividing n while keeping >= 2 grid steps (v7x)."""
    for cand in (8, 4, 2, 1):
        if n % cand == 0 and n // cand >= 2:
            return cand
    return n  # n == 1: single step


def _conv_mm_relu_kernel(x_ref, w_ref, b_ref, o_ref, col_ref, *,
                         KH, KW, W, B, Lp, L, Cin_pad):
    # x_ref:   [Cin_pad, B*Lp]  B padded, flattened (row-major) images
    # w_ref:   [Cout, K]        K = KH*KW*Cin_pad, tap-major / cin-minor
    # b_ref:   [Cout, 1]
    # o_ref:   [Cout, B*L]      column b*L + oh*W + ow (invalid cols cropped later)
    # col_ref: [K, B*L]         scratch: all shifted views gathered once
    for b in range(B):
        for kh in range(KH):
            for kw in range(KW):
                tap = kh * KW + kw
                s = b * Lp + kh * W + kw            # static flat shift
                col_ref[tap * Cin_pad:(tap + 1) * Cin_pad,
                        b * L:(b + 1) * L] = x_ref[:, s:s + L]
    # Single fused matmul on the MXU: [Cout, K] @ [K, B*L]
    acc = jnp.dot(w_ref[...], col_ref[...], preferred_element_type=jnp.float32)
    acc = acc + b_ref[...]                          # broadcast [Cout, 1]
    o_ref[...] = jnp.maximum(acc, 0.0).astype(o_ref.dtype)


def conv2d_relu_pallas(x, weight, bias):
    """x: [N, Cin, H, W]; weight: [Cout, Cin, KH, KW]; bias: [Cout].
    Returns ReLU(conv2d(x, weight) + bias), stride 1, no padding, NCHW."""
    N, Cin, H, W = x.shape
    Cout, _, KH, KW = weight.shape
    OH, OW = H - KH + 1, W - KW + 1

    Cin_pad = _round_up(Cin, 8)                     # sublane-aligned taps
    K = KH * KW * Cin_pad                           # fused contraction dim
    L = _round_up(OH * W, 128)                      # lane-dense cols per image
    s_max = (KH - 1) * W + (KW - 1)                 # largest flat shift
    Lp = _round_up(s_max + L, 128)                  # per-image stride (shifts in bounds)

    B = _pick_batch_block(N)
    grid = (N // B,)

    # One-time layout prep on small arrays (no 9x im2col expansion in HBM).
    #   x -> [Cin_pad, N*Lp]: cin-major, flat padded image minor.
    x_flat = x.reshape(N, Cin, H * W)
    x_flat = jnp.pad(x_flat, ((0, 0), (0, Cin_pad - Cin), (0, Lp - H * W)))
    x_flat = jnp.transpose(x_flat, (1, 0, 2)).reshape(Cin_pad, N * Lp)
    #   weight -> [Cout, K] with K index = (kh*KW + kw)*Cin_pad + cin.
    w_r = jnp.pad(jnp.transpose(weight, (0, 2, 3, 1)),
                  ((0, 0), (0, 0), (0, 0), (0, Cin_pad - Cin))).reshape(Cout, K)
    b_r = bias.reshape(Cout, 1)

    kernel = functools.partial(_conv_mm_relu_kernel, KH=KH, KW=KW, W=W,
                               B=B, Lp=Lp, L=L, Cin_pad=Cin_pad)

    out = pl.pallas_call(
        kernel,
        out_shape=jax.ShapeDtypeStruct((Cout, N * L), x.dtype),
        grid=grid,
        in_specs=[
            # B padded images per grid step.
            pl.BlockSpec((Cin_pad, B * Lp), lambda n: (0, n)),
            # Weights / bias: constant block index -> stay resident in VMEM.
            pl.BlockSpec((Cout, K), lambda n: (0, 0)),
            pl.BlockSpec((Cout, 1), lambda n: (0, 0)),
        ],
        out_specs=pl.BlockSpec((Cout, B * L), lambda n: (0, n)),
        scratch_shapes=[pltpu.VMEM((K, B * L), x.dtype)],
        compiler_params=pltpu.CompilerParams(
            dimension_semantics=("parallel",)),
        cost_estimate=pl.CostEstimate(
            flops=2 * N * Cout * OH * OW * Cin * KH * KW,
            transcendentals=0,
            bytes_accessed=4 * (Cin_pad * N * Lp + Cout * K + Cout
                                + Cout * N * L)),
    )(x_flat, w_r, b_r)

    # [Cout, N*L] -> NCHW, dropping padded / garbage columns (done once, outside
    # the kernel, so in-kernel stores stay unmasked and lane-dense).
    y = out.reshape(Cout, N, L)[:, :, :OH * W]
    y = y.reshape(Cout, N, OH, W)[:, :, :, :OW]
    return jnp.transpose(y, (1, 0, 2, 3))


if __name__ == "__main__":
    key = jax.random.PRNGKey(0)
    k_x, k_w, k_b = jax.random.split(key, 3)

    # Small shapes consistent with Conv2d(3, 64, 3): N=2, Cin=3, H=W=16
    N, Cin, H, W = 2, 3, 16, 16
    Cout, KH, KW = 64, 3, 3

    x = jax.random.normal(k_x, (N, Cin, H, W), dtype=jnp.float32)
    fan_in = Cin * KH * KW
    bound = 1.0 / jnp.sqrt(fan_in)
    weight = jax.random.uniform(k_w, (Cout, Cin, KH, KW), minval=-bound,
                                maxval=bound, dtype=jnp.float32)
    bias = jax.random.uniform(k_b, (Cout,), minval=-bound, maxval=bound,
                              dtype=jnp.float32)

    y = conv2d_relu_pallas(x, weight, bias)
    y = jax.block_until_ready(y)

    # Reference check against XLA conv (NCHW, OIHW)
    ref = jax.lax.conv_general_dilated(
        x, weight, window_strides=(1, 1), padding="VALID",
        dimension_numbers=("NCHW", "OIHW", "NCHW"))
    ref = jnp.maximum(ref + bias.reshape(1, Cout, 1, 1), 0.0)
    assert y.shape == (N, Cout, H - 2, W - 2)
    assert jnp.allclose(y, ref, atol=1e-4, rtol=1e-4)

    print("KERNEL_OK")
</pallas_src>

<mosaic_0001>
module attributes {stable_mosaic.version = 11 : i64} {
  func.func @_conv_mm_relu_kernel(%arg0: i32, %arg1: memref<8x384xf32, #tpu.memory_space<vmem>>, %arg2: memref<64x72xf32, #tpu.memory_space<vmem>>, %arg3: memref<64x1xf32, #tpu.memory_space<vmem>>, %arg4: memref<64x256xf32, #tpu.memory_space<vmem>>, %arg5: memref<72x256xf32, #tpu.memory_space<vmem>>) attributes {dimension_semantics = [#tpu.dimension_semantics<parallel>], iteration_bounds = array<i64: 2>, scalar_prefetch = 0 : i64, scratch_operands = 1 : i64, tpu.core_type = #tpu.core_type<tc>, window_params = [{transform_indices = @transform_0, window_bounds = array<i64: 8, 384>}, {pipeline_mode = #tpu.pipeline_mode<synchronous>, transform_indices = @transform_1, window_bounds = array<i64: 64, 72>}, {pipeline_mode = #tpu.pipeline_mode<synchronous>, transform_indices = @transform_2, window_bounds = array<i64: 64, 1>}, {transform_indices = @transform_3, window_bounds = array<i64: 64, 256>}]} {
    %c0 = arith.constant 0 : index
    %c0_0 = arith.constant 0 : index
    %0 = vector.load %arg1[%c0, %c0_0] : memref<8x384xf32, #tpu.memory_space<vmem>>, vector<8x256xf32>
    %c0_1 = arith.constant 0 : index
    %c0_2 = arith.constant 0 : index
    %1 = vector.load %arg5[%c0_1, %c0_2] : memref<72x256xf32, #tpu.memory_space<vmem>>, vector<8x256xf32>
    tpu.vector_store %arg5[%c0_1, %c0_2], %0 {strides = array<i32>} : memref<72x256xf32, #tpu.memory_space<vmem>>, vector<8x256xf32>,
    %c0_3 = arith.constant 0 : index
    %c1 = arith.constant 1 : index
    %2 = vector.load %arg1[%c0_3, %c1] : memref<8x384xf32, #tpu.memory_space<vmem>>, vector<8x256xf32>
    %c8 = arith.constant 8 : index
    %c0_4 = arith.constant 0 : index
    %3 = vector.load %arg5[%c8, %c0_4] : memref<72x256xf32, #tpu.memory_space<vmem>>, vector<8x256xf32>
    tpu.vector_store %arg5[%c8, %c0_4], %2 {strides = array<i32>} : memref<72x256xf32, #tpu.memory_space<vmem>>, vector<8x256xf32>,
    %c0_5 = arith.constant 0 : index
    %c2 = arith.constant 2 : index
    %4 = vector.load %arg1[%c0_5, %c2] : memref<8x384xf32, #tpu.memory_space<vmem>>, vector<8x256xf32>
    %c16 = arith.constant 16 : index
    %c0_6 = arith.constant 0 : index
    %5 = vector.load %arg5[%c16, %c0_6] : memref<72x256xf32, #tpu.memory_space<vmem>>, vector<8x256xf32>
    tpu.vector_store %arg5[%c16, %c0_6], %4 {strides = array<i32>} : memref<72x256xf32, #tpu.memory_space<vmem>>, vector<8x256xf32>,
    %c0_7 = arith.constant 0 : index
    %c16_8 = arith.constant 16 : index
    %6 = vector.load %arg1[%c0_7, %c16_8] : memref<8x384xf32, #tpu.memory_space<vmem>>, vector<8x256xf32>
    %c24 = arith.constant 24 : index
    %c0_9 = arith.constant 0 : index
    %7 = vector.load %arg5[%c24, %c0_9] : memref<72x256xf32, #tpu.memory_space<vmem>>, vector<8x256xf32>
    tpu.vector_store %arg5[%c24, %c0_9], %6 {strides = array<i32>} : memref<72x256xf32, #tpu.memory_space<vmem>>, vector<8x256xf32>,
    %c0_10 = arith.constant 0 : index
    %c17 = arith.constant 17 : index
    %8 = vector.load %arg1[%c0_10, %c17] : memref<8x384xf32, #tpu.memory_space<vmem>>, vector<8x256xf32>
    %c32 = arith.constant 32 : index
    %c0_11 = arith.constant 0 : index
    %9 = vector.load %arg5[%c32, %c0_11] : memref<72x256xf32, #tpu.memory_space<vmem>>, vector<8x256xf32>
    tpu.vector_store %arg5[%c32, %c0_11], %8 {strides = array<i32>} : memref<72x256xf32, #tpu.memory_space<vmem>>, vector<8x256xf32>,
    %c0_12 = arith.constant 0 : index
    %c18 = arith.constant 18 : index
    %10 = vector.load %arg1[%c0_12, %c18] : memref<8x384xf32, #tpu.memory_space<vmem>>, vector<8x256xf32>
    %c40 = arith.constant 40 : index
    %c0_13 = arith.constant 0 : index
    %11 = vector.load %arg5[%c40, %c0_13] : memref<72x256xf32, #tpu.memory_space<vmem>>, vector<8x256xf32>
    tpu.vector_store %arg5[%c40, %c0_13], %10 {strides = array<i32>} : memref<72x256xf32, #tpu.memory_space<vmem>>, vector<8x256xf32>,
    %c0_14 = arith.constant 0 : index
    %c32_15 = arith.constant 32 : index
    %12 = vector.load %arg1[%c0_14, %c32_15] : memref<8x384xf32, #tpu.memory_space<vmem>>, vector<8x256xf32>
    %c48 = arith.constant 48 : index
    %c0_16 = arith.constant 0 : index
    %13 = vector.load %arg5[%c48, %c0_16] : memref<72x256xf32, #tpu.memory_space<vmem>>, vector<8x256xf32>
    tpu.vector_store %arg5[%c48, %c0_16], %12 {strides = array<i32>} : memref<72x256xf32, #tpu.memory_space<vmem>>, vector<8x256xf32>,
    %c0_17 = arith.constant 0 : index
    %c33 = arith.constant 33 : index
    %14 = vector.load %arg1[%c0_17, %c33] : memref<8x384xf32, #tpu.memory_space<vmem>>, vector<8x256xf32>
    %c56 = arith.constant 56 : index
    %c0_18 = arith.constant 0 : index
    %15 = vector.load %arg5[%c56, %c0_18] : memref<72x256xf32, #tpu.memory_space<vmem>>, vector<8x256xf32>
    tpu.vector_store %arg5[%c56, %c0_18], %14 {strides = array<i32>} : memref<72x256xf32, #tpu.memory_space<vmem>>, vector<8x256xf32>,
    %c0_19 = arith.constant 0 : index
    %c34 = arith.constant 34 : index
    %16 = vector.load %arg1[%c0_19, %c34] : memref<8x384xf32, #tpu.memory_space<vmem>>, vector<8x256xf32>
    %c64 = arith.constant 64 : index
    %c0_20 = arith.constant 0 : index
    %17 = vector.load %arg5[%c64, %c0_20] : memref<72x256xf32, #tpu.memory_space<vmem>>, vector<8x256xf32>
    tpu.vector_store %arg5[%c64, %c0_20], %16 {strides = array<i32>} : memref<72x256xf32, #tpu.memory_space<vmem>>, vector<8x256xf32>,
    %c0_21 = arith.constant 0 : index
    %c0_22 = arith.constant 0 : index
    %18 = vector.load %arg2[%c0_21, %c0_22] : memref<64x72xf32, #tpu.memory_space<vmem>>, vector<64x72xf32>
    %c0_23 = arith.constant 0 : index
    %c0_24 = arith.constant 0 : index
    %19 = vector.load %arg5[%c0_23, %c0_24] : memref<72x256xf32, #tpu.memory_space<vmem>>, vector<72x256xf32>
    %cst = arith.constant dense<0.000000e+00> : vector<64x256xf32>
    %20 = tpu.matmul %18, %19, %cst {dimension_numbers = #tpu.dot_dimension_numbers<[1], [0], [0], [1], [0, 0, 1, 1], [], []>} : vector<64x72xf32>, vector<72x256xf32>, vector<64x256xf32> -> vector<64x256xf32>
    %c0_25 = arith.constant 0 : index
    %c0_26 = arith.constant 0 : index
    %21 = vector.load %arg3[%c0_25, %c0_26] : memref<64x1xf32, #tpu.memory_space<vmem>>, vector<64x1xf32>
    %22 = vector.broadcast %21 : vector<64x1xf32> to vector<64x256xf32>
    %23 = arith.addf %20, %22 : vector<64x256xf32>
    %cst_27 = arith.constant 0.000000e+00 : f32
    %24 = vector.broadcast %cst_27 : f32 to vector<64x256xf32>
    %25 = arith.maximumf %23, %24 : vector<64x256xf32>
    %c0_28 = arith.constant 0 : index
    %c0_29 = arith.constant 0 : index
    %26 = vector.load %arg4[%c0_28, %c0_29] : memref<64x256xf32, #tpu.memory_space<vmem>>, vector<64x256xf32>
    tpu.vector_store %arg4[%c0_28, %c0_29], %25 {strides = array<i32>} : memref<64x256xf32, #tpu.memory_space<vmem>>, vector<64x256xf32>,
    return
  }
  func.func @transform_0(%arg0: i32) -> (i32, i32) {
    %c0_i32 = arith.constant 0 : i32
    %c0_i32_0 = arith.constant 0 : i32
    return %c0_i32, %arg0 : i32, i32
  }
  func.func @transform_1(%arg0: i32) -> (i32, i32) {
    %c0_i32 = arith.constant 0 : i32
    %c0_i32_0 = arith.constant 0 : i32
    %c0_i32_1 = arith.constant 0 : i32
    return %c0_i32, %c0_i32_0 : i32, i32
  }
  func.func @transform_2(%arg0: i32) -> (i32, i32) {
    %c0_i32 = arith.constant 0 : i32
    %c0_i32_0 = arith.constant 0 : i32
    %c0_i32_1 = arith.constant 0 : i32
    return %c0_i32, %c0_i32_0 : i32, i32
  }
  func.func @transform_3(%arg0: i32) -> (i32, i32) {
    %c0_i32 = arith.constant 0 : i32
    %c0_i32_0 = arith.constant 0 : i32
    return %c0_i32, %arg0 : i32, i32
  }
}

</mosaic_0001>

<bundles_post_ra>
// kernel: tpu_custom_call.1
= control target key start
LH: loop header
LB: loop body
LE: loop exit
PB: predicated region body
PF: predicated region fallthrough
CT: control target
= control target key end

     0   :  { %8 = vsyncpa [#allocation4], 0  ;;  %s1150_s0 = inlined_call_operand.hbm [shape: f32[8,768], index: 0, kind: input, shape index: {}]   ;;  %s1151_s1 = inlined_call_operand.vmem [shape: f32[64,72], index: 1, kind: input, shape index: {}]   ;;  %s1152_s2 = inlined_call_operand.vmem [shape: f32[64,1], index: 2, kind: input, shape index: {}]   ;;  %s1153_s3 = inlined_call_operand.hbm [shape: f32[64,512], index: 3, kind: output, shape index: {}]  }
   0x1   :  { %10 = vsyncpa [#allocation4 + $0x1], 0 }
   0x2   :  { %11 = vsyncpa [#allocation5], 0 }
   0x3   :  { %13 = vsyncpa [#allocation5 + $0x1], 0  ;;  %s929_s12 = smov 0   ;;  %s931_s13 = smov 0  }
   0x4   :  { %s933_s14 = smov 0   ;;  %s935_s15 = smov 0  }
   0x5 LB: > { %s950_s16 = sadd.s32 4294967295, %s895_s15   ;;  %s649_s17 = sadd.s32 4294967294, %s895_s15   ;;  %s895_s15 = sphi %s935_s15, %s1161_s15   ;;  %s891_s14 = sphi %s933_s14, %s1160_s14   ;;  %s887_s13 = sphi %s931_s13, %s1159_s13   ;;  %s883_s12 = sphi %s929_s12, %s1158_s12  }
   0x6   : > { %s954_s18 = sadd.s32 1, %s895_s15   ;;  %s26_s19 = sadd.s32 1, %s891_s14 }
   0x7   : > { %s23_s20 = ssub.s32 %s895_s15, %s954_s18  ;;  %p33_p0 = scmp.ne.s32.totalorder %s891_s14, %s887_s13 }
   0x8   : > { %p24_p1 = scmp.eq.s32.totalorder %s23_s20, 0  ;;  %p34_p2 = scmp.eq.s32.totalorder %s895_s15, 0 }
   0x9   : > { %p39_p3 = scmp.ne.s32.totalorder %s887_s13, %s883_s12  ;;  %p40_p4 = scmp.eq.s32.totalorder %s950_s16, 0 }
   0xa   : > { %s966_s21 = scalar_select %p24_p1, %s891_s14, %s26_s19  }
   0xb   : > { %p35_p5 = por %p34_p2, %p33_p0  ;;  %p968_p6 = por %p40_p4, %p39_p3 }
   0xc   : > { %p105_p7 = scmp.eq.s32.totalorder %s950_s16, 1  ;;  %p111_p8 = scmp.eq.s32.totalorder %s649_s17, 1 }
   0xd   : > { %p651_p9 = scmp.ge.s32.totalorder %s895_s15, 2  ;;  %p710_p10 = scmp.lt.s32.totalorder %s895_s15, 2 }
   0xe   : > { %p975_p11 = por %p105_p7, %p33_p0  ;;  %p979_p12 = por %p111_p8, %p39_p3 }
   0xf   : > { %s137_s25 = sand.u32 1, %s891_s14   ;;  %s676_s26 = smul.u32 24, %s895_s15 }
  0x10   : > { %s696_s27 = smul.u32 24, %s137_s25  ;;  %p988_p13 = pnand %p710_p10, %p35_p5 }
  0x11   : > { %s146_s30 = scalar_lea.hbm %s1150_s0, %s676_s26  ;;  %s138_s8 = scalar_lea.sflag [#allocation4], %s137_s25 }
  0x12   : > { %s148_s5 = sshll.u32 %s146_s30, 4  ;;  %s141_s6 = scalar_lea.vmem [#allocation3], %s696_s27  ;;  %s149_s5 = int_to_ptr.hbm [resolvable:$true] %s148_s5 }
  0x13   : > { %s150_s7 = sshll.u32 %s141_s6, 4  ;;  %s799_s9 = sshra.s32 %s149_s5, 4  ;;  %s151_s7 = int_to_ptr.vmem [resolvable:$true] %s150_s7  ;;  %s800_s9 = int_to_ptr.hbm [resolvable:$true] %s799_s9 }
  0x14   : > { %s801_s10 = scalar_lea.hbm %s800_s9, 24  ;;  %p803_p1 = pneg %p988_p13 }
  0x15   : > { %p802_p0 = scmp.ne.s32.totalorder %s800_s9, %s801_s10  ;;  %s806_s19 = scalar_lea.hbm %s1150_s0, 48 }
  0x16   : > { %p807_p4 = scmp.lt.s32.totalorder %s800_s9, %s1150_s0  ;;  %p808_p5 = scmp.lt.s32.totalorder %s806_s19, %s801_s10 }
  0x17   : > { %p804_p2 = pnand %p803_p1, %p802_p0 }
  0x18   : > { %p809_p7 = por %p808_p5, %p807_p4 }
  0x19   : > { %p805_p3 = pneg %p804_p2 }
  0x1b   : > { %p810_p8 = pnand %p809_p7, %p805_p3 }
  0x1d   : > { %813 = shalt.err (!%p810_p8)
}
  0x1e   : > { %705 = dma.hbm_to_vmem [thread:$0]  (!%p988_p13), %s149_s5, 384, %s151_s7, %s138_s8  }
  0x1f   : > { %p653_p10 = scmp.ge.s32.totalorder %s895_s15, 1  ;;  %p155_p0 = scmp.lt.s32.totalorder %s895_s15, 3 }
  0x21   : > { %p156_p1 = pnand %p653_p10, %p155_p0 }
  0x22   : > { %s1005_s25 = sand.u32 (!%p156_p1), 1, %s887_s13  }
  0x23   : > { %159 = sbr.rel (%p156_p1) target bundleno = 368 (0x170), region = 32  ;;  %s162_s28 = scalar_lea.sflag (!%p156_p1), [#allocation4], %s1005_s25 }
  0x24   : > { %s697_s27 = smul.u32 (!%p156_p1), 24, %s1005_s25 }
  0x26   : > { %s165_s29 = scalar_lea.vmem (!%p156_p1), [#allocation3], %s697_s27 }
  0x28   : > { %874 = dma.done.wait (%p968_p6), %s162_s28, 384  }
  0x29   : > { %876 = vsyncadd (%p968_p6), %s162_s28, 4294966912  ;;  %v1013_v0 = vld [vmem:[%s165_s29] sm:$0xff]  ;;  %v1015_v1 = vld [vmem:[%s165_s29 + $0x8] sm:$0xff]  ;;  %s897_s30 = smov 94   ;;  %s898_s4 = smov 95   ;;  %vm340_vm0 = vcmask 769024  }
  0x2a   : > { %v756_v2 = vpack.i.bf16 %v1015_v1, %v1013_v0  ;;  %s899_s5 = smov 96   ;;  %v330_v3 = vld [vmem:[%s165_s29 + $0x10] sm:$0xff]  ;;  %s900_s6 = smov 110   ;;  %vm321_vm1 = vcmask 777216   ;;  %vm302_vm2 = vcmask 785408   ;;  %vm283_vm3 = vcmask 900096  }
  0x2b   : > { %s901_s22 = smov 111   ;;  %s902_s7 = smov 112   ;;  %vm264_vm4 = vcmask 908288   ;;  %v905_v30 = vmov 0   ;;  %v373_v34 = vld [vmem:[%s1152_s2] sm:$0xff]  ;;  %vm245_vm5 = vcmask 916480  }
  0x2c   : > { %757 = vrot.lane.b32.xlu0 %v756_v2, %s897_s30  ;;  %762 = vrot.lane.b32.xlu1 %v756_v2, %s898_s4  ;;  %s903_s8 = smov 126   ;;  %s904_s9 = smov 127   ;;  %v376_v43 = vld [vmem:[%s1152_s2 + $0x18] sm:$0xff]  ;;  %vm226_vm6 = vcmask 1031168   ;;  %vm207_vm7 = vcmask 1039360   ;;  %v378_v53 = vld [vmem:[%s1152_s2 + $0x28] sm:$0xff] }
  0x2d   : > { %767 = vrot.lane.b32.xlu2 %v756_v2, %s899_s5  ;;  %796 = vset.pattern.permute.xlu1 %v905_v30  ;;  %v375_v54 = vld [vmem:[%s1152_s2 + $0x10] sm:$0xff]  ;;  %v347_v55 = vld [vmem:[%s1151_s1] sm:$0xff]  ;;  %vm421_vm8 = vcmask 588800   ;;  %v374_v58 = vld [vmem:[%s1152_s2 + $0x8] sm:$0xff]  ;;  %s677_s10 = sshll.u32 %s950_s16, 4  ;;  %s561_s26 = scalar_lea.sflag [#allocation5], %s1005_s25 }
  0x2e   : > { %798 = vset.pattern.permute.xlu0 %v905_v30  ;;  %797 = vset.pattern.permute.xlu2 %v905_v30  ;;  %v351_v56 = vld [vmem:[%s1151_s1 + $0x20] sm:$0xff]  ;;  %v380_v60 = vld [vmem:[%s1152_s2 + $0x38] sm:$0xff]  ;;  %v348_v61 = vld [vmem:[%s1151_s1 + $0x8] sm:$0xff]  ;;  %s572_s19 = scalar_lea.hbm %s1153_s3, %s677_s10 }
  0x2f   : > { %v352_v62 = vld [vmem:[%s1151_s1 + $0x28] sm:$0xff]  ;;  %v377_v63 = vld [vmem:[%s1152_s2 + $0x20] sm:$0xff]  ;;  %s575_s16 = sshll.u32 %s572_s19, 4  ;;  %s576_s16 = int_to_ptr.hbm [resolvable:$true] %s575_s16 }
  0x30   : > { %s843_s27 = sshra.s32 %s576_s16, 4  ;;  %s844_s27 = int_to_ptr.hbm [resolvable:$true] %s843_s27 }
  0x31   : > { %s845_s28 = scalar_lea.hbm %s844_s27, 128  ;;  %p850_p3 = scmp.lt.s32.totalorder %s844_s27, %s1153_s3 }
  0x32   : > { %p846_p6 = scmp.ne.s32.totalorder %s844_s27, %s845_s28 }
  0x34   : > { %338 = vrot.lane.b32.xlu0 %v330_v3, %s897_s30  ;;  %319 = vrot.lane.b32.xlu1 %v330_v3, %s898_s4  ;;  %p847_p13 = pnand %p846_p6, %p975_p11  ;;  %s849_s4 = scalar_lea.hbm %s1153_s3, 256 }
  0x35   : > { %300 = vrot.lane.b32.xlu2 %v330_v3, %s899_s5  ;;  %p851_p4 = scmp.lt.s32.totalorder %s849_s4, %s845_s28 }
  0x36   : > { %p848_p2 = pneg %p847_p13 }
  0x37   : > { %p852_p5 = por %p851_p4, %p850_p3 }
  0x39   : > { %p853_p7 = pnand %p852_p5, %p848_p2 }
  0x3c   : > { %772 = vrot.lane.b32.xlu0 %v756_v2, %s900_s6  ;;  %281 = vrot.lane.b32.xlu1 %v330_v3, %s900_s6 }
  0x3d   : > { %777 = vrot.lane.b32.xlu2 %v756_v2, %s901_s22 }
  0x44   : > { %262 = vrot.lane.b32.xlu0 %v330_v3, %s901_s22  ;;  %782 = vrot.lane.b32.xlu1 %v756_v2, %s902_s7 }
  0x45   : > { %243 = vrot.lane.b32.xlu2 %v330_v3, %s902_s7 }
  0x4c   : > { %787 = vrot.lane.b32.xlu0 %v756_v2, %s903_s8  ;;  %224 = vrot.lane.b32.xlu1 %v330_v3, %s903_s8  ;;  %s654_s8 = sshll.u32 %s1005_s25, 7 }
  0x4d   : > { %792 = vrot.lane.b32.xlu2 %v756_v2, %s904_s9  ;;  %v379_v2 = vld [vmem:[%s1152_s2 + $0x30] sm:$0xff] }
  0x54   : > { %205 = vrot.lane.b32.xlu0 %v330_v3, %s904_s9  ;;  %383 = vperm.xlu1 %796, %v373_v34   ;;  %v350_v3 = vld [vmem:[%s1151_s1 + $0x18] sm:$0xff]  ;;  %s1098_s9 = scalar_lea.vmem [#allocation6], %s654_s8 }
  0x55   : > { %388 = vperm.xlu2 %797, %v374_v58   ;;  %s573_s20 = sshll.u32 %s1098_s9, 4  ;;  %s574_s20 = int_to_ptr.vmem [resolvable:$true] %s573_s20 }
  0x5c   : > { %398 = vperm.xlu1 %796, %v376_v43   ;;  %393 = vperm.xlu0 %798, %v375_v54  }
  0x5d   : > { %403 = vperm.xlu2 %797, %v377_v63  }
  0x64   : > { %408 = vperm.xlu1 %796, %v378_v53   ;;  %418 = vperm.xlu0 %798, %v380_v60  }
  0x65   : > { %413 = vperm.xlu2 %797, %v379_v2  }
  0x87   : > { %v768_v4 = vpop.permute.xlu2 %767 }
  0x88   : > { %v770_v8 = vunpack.i.h.bf16 %v768_v4  ;;  %v769_v9 = vunpack.i.l.bf16 %v768_v4  ;;  %v354_v4 = vld [vmem:[%s1151_s1 + $0x38] sm:$0xff] }
  0x8a   : > { %v303_v16 = vsel %vm302_vm2, %v769_v9, %v770_v8 }
  0x8f   : > { %v301_v5 = vpop.permute.xlu2 %300 }
  0x90   : > { %v304_v22 = vsel %vm302_vm2, %v770_v8, %v301_v5 }
  0x97   : > { %v778_v17 = vpop.permute.xlu2 %777 }
  0x98   : > { %v780_v23 = vunpack.i.h.bf16 %v778_v17  ;;  %v779_v24 = vunpack.i.l.bf16 %v778_v17 }
  0x9a   : > { %v265_v33 = vsel %vm264_vm4, %v779_v24, %v780_v23 }
  0x9e   : > { %v758_v6 = vpop.permute.xlu0 %757  ;;  %v763_v7 = vpop.permute.xlu1 %762 }
  0x9f   : > { %v760_v10 = vunpack.i.h.bf16 %v758_v6  ;;  %v759_v11 = vunpack.i.l.bf16 %v758_v6  ;;  %v765_v12 = vunpack.i.h.bf16 %v763_v7  ;;  %v764_v13 = vunpack.i.l.bf16 %v763_v7  ;;  %v244_v29 = vpop.permute.xlu2 %243 }
  0xa1   : > { %v341_v14 = vsel %vm340_vm0, %v759_v11, %v760_v10  ;;  %v322_v15 = vsel %vm321_vm1, %v764_v13, %v765_v12 }
  0xa2   : > { %453 = vmatpush.msra.mxu0 %v341_v14  ;;  %678 = vmatpush.msra.mxu2 %v341_v14 }
  0xa4   : > { %454 = vmatpush.msra.mxu0 %v322_v15  ;;  %679 = vmatpush.msra.mxu2 %v322_v15 }
  0xa6   : > { %v339_v18 = vpop.permute.xlu0 %338  ;;  %v320_v19 = vpop.permute.xlu1 %319  ;;  %455 = vmatpush.msra.mxu0 %v303_v16  ;;  %680 = vmatpush.msra.mxu2 %v303_v16 }
  0xa7   : > { %v342_v20 = vsel %vm340_vm0, %v760_v10, %v339_v18  ;;  %v323_v21 = vsel %vm321_vm1, %v765_v12, %v320_v19  ;;  %v793_v42 = vpop.permute.xlu2 %792 }
  0xa8   : > { %494 = vmatpush.msra.mxu1 %v342_v20  ;;  %687 = vmatpush.msra.mxu3 %v342_v20  ;;  %v795_v44 = vunpack.i.h.bf16 %v793_v42  ;;  %v794_v45 = vunpack.i.l.bf16 %v793_v42 }
  0xaa   : > { %495 = vmatpush.msra.mxu1 %v323_v21  ;;  %688 = vmatpush.msra.mxu3 %v323_v21  ;;  %v208_v52 = vsel %vm207_vm7, %v794_v45, %v795_v44 }
  0xac   : > { %496 = vmatpush.msra.mxu1 %v304_v22  ;;  %689 = vmatpush.msra.mxu3 %v304_v22 }
  0xae   : > { %v773_v25 = vpop.permute.xlu0 %772  ;;  %v282_v26 = vpop.permute.xlu1 %281 }
  0xaf   : > { %v775_v27 = vunpack.i.h.bf16 %v773_v25  ;;  %v774_v28 = vunpack.i.l.bf16 %v773_v25  ;;  %v389_v6 = vpop.permute.xlu2 %388 }
  0xb1   : > { %v284_v31 = vsel %vm283_vm3, %v774_v28, %v775_v27  ;;  %v285_v32 = vsel %vm283_vm3, %v775_v27, %v282_v26 }
  0xb2   : > { %456 = vmatpush.msra.mxu0 %v284_v31  ;;  %681 = vmatpush.msra.mxu2 %v284_v31 }
  0xb3   : > { %497 = vmatpush.msra.mxu1 %v285_v32  ;;  %690 = vmatpush.msra.mxu3 %v285_v32 }
  0xb4   : > { %457 = vmatpush.msra.mxu0 %v265_v33  ;;  %682 = vmatpush.msra.mxu2 %v265_v33 }
  0xb6   : > { %v263_v35 = vpop.permute.xlu0 %262  ;;  %v783_v36 = vpop.permute.xlu1 %782 }
  0xb7   : > { %v266_v37 = vsel %vm264_vm4, %v780_v23, %v263_v35  ;;  %v785_v38 = vunpack.i.h.bf16 %v783_v36  ;;  %v784_v39 = vunpack.i.l.bf16 %v783_v36  ;;  %v404_v12 = vpop.permute.xlu2 %403 }
  0xb8   : > { %498 = vmatpush.msra.mxu1 %v266_v37  ;;  %691 = vmatpush.msra.mxu3 %v266_v37 }
  0xb9   : > { %v247_v40 = vsel %vm245_vm5, %v785_v38, %v244_v29  ;;  %v246_v41 = vsel %vm245_vm5, %v784_v39, %v785_v38 }
  0xba   : > { %499 = vmatpush.msra.mxu1 %v247_v40  ;;  %692 = vmatpush.msra.mxu3 %v247_v40 }
  0xbb   : > { %458 = vmatpush.msra.mxu0 %v246_v41  ;;  %683 = vmatpush.msra.mxu2 %v246_v41 }
  0xbe   : > { %v788_v46 = vpop.permute.xlu0 %787  ;;  %v225_v47 = vpop.permute.xlu1 %224 }
  0xbf   : > { %v790_v48 = vunpack.i.h.bf16 %v788_v46  ;;  %v789_v49 = vunpack.i.l.bf16 %v788_v46  ;;  %v414_v40 = vpop.permute.xlu2 %413 }
  0xc1   : > { %v227_v50 = vsel %vm226_vm6, %v789_v49, %v790_v48  ;;  %v228_v51 = vsel %vm226_vm6, %v790_v48, %v225_v47 }
  0xc2   : > { %459 = vmatpush.msra.mxu0 %v227_v50  ;;  %684 = vmatpush.msra.mxu2 %v227_v50 }
  0xc3   : > { %500 = vmatpush.msra.mxu1 %v228_v51  ;;  %693 = vmatpush.msra.mxu3 %v228_v51 }
  0xc4   : > { %460 = vmatpush.msra.mxu0 %v208_v52  ;;  %685 = vmatpush.msra.mxu2 %v208_v52 }
  0xc6   : > { %v206_v57 = vpop.permute.xlu0 %205  ;;  %461 = vmatpush.msra.mxu0 %v1013_v0  ;;  %686 = vmatpush.msra.mxu2 %v1013_v0  ;;  %v349_v0 = vld [vmem:[%s1151_s1 + $0x10] sm:$0xff]  ;;  %v384_v5 = vpop.permute.xlu1 %383 }
  0xc7   : > { %655 = vmatmul.msk.f32.vlgmr.msra.gmra.mxu0 %vm421_vm8, %v347_v55  ;;  %659 = vmatmul.msk.f32.vlgmr.msra.gmra.mxu2 %vm421_vm8, %v351_v56  ;;  %v209_v59 = vsel %vm207_vm7, %v795_v44, %v206_v57 }
  0xc8   : > { %501 = vmatpush.msra.mxu1 %v209_v59  ;;  %694 = vmatpush.msra.mxu3 %v209_v59 }
  0xca   : > { %502 = vmatpush.msra.mxu1 %v1015_v1  ;;  %695 = vmatpush.msra.mxu3 %v1015_v1  ;;  %v353_v1 = vld [vmem:[%s1151_s1 + $0x30] sm:$0xff] }
  0xcb   : > { %663 = vmatmul.msk.f32.vlgmr.msra.gmra.mxu1 %vm421_vm8, %v347_v55  ;;  %667 = vmatmul.msk.f32.vlgmr.msra.gmra.mxu3 %vm421_vm8, %v351_v56 }
  0xce   : > { %v399_v9 = vpop.permute.xlu1 %398  ;;  %v394_v31 = vpop.permute.xlu0 %393 }
  0xcf   : > { %656 = vmatmul.msk.f32.gmra.mxu0 %vm421_vm8, %v348_v61  ;;  %660 = vmatmul.msk.f32.gmra.mxu2 %vm421_vm8, %v352_v62 }
  0xd3   : > { %664 = vmatmul.msk.f32.gmra.mxu1 %vm421_vm8, %v348_v61  ;;  %668 = vmatmul.msk.f32.gmra.mxu3 %vm421_vm8, %v352_v62 }
  0xd6   : > { %v409_v24 = vpop.permute.xlu1 %408  ;;  %v419_v53 = vpop.permute.xlu0 %418 }
  0xd7   : > { %657 = vmatmul.msk.f32.gmra.mxu0 %vm421_vm8, %v349_v0  ;;  %661 = vmatmul.msk.f32.gmra.mxu2 %vm421_vm8, %v353_v1 }
  0xdb   : > { %665 = vmatmul.msk.f32.gmra.mxu1 %vm421_vm8, %v349_v0  ;;  %669 = vmatmul.msk.f32.gmra.mxu3 %vm421_vm8, %v353_v1 }
  0xdf   : > { %658 = vmatmul.msk.f32.gmra.mxu0 %vm421_vm8, %v350_v3  ;;  %662 = vmatmul.msk.f32.gmra.mxu2 %vm421_vm8, %v354_v4 }
  0xe3   : > { %666 = vmatmul.msk.f32.gmra.mxu1 %vm421_vm8, %v350_v3  ;;  %670 = vmatmul.msk.f32.gmra.mxu3 %vm421_vm8, %v354_v4 }
 0x144   : > { %v463_v7 = vpop.f32.mrf.mxu0 }
 0x145   : > { %v464_v8 = vadd.f32 %v463_v7, %v384_v5 }
 0x147   : > { %v528_v10 = vmax.f32 %v464_v8, 0.0 }
 0x148   : > { %v504_v11 = vpop.f32.mrf.mxu1 }
 0x149   : > { %544 = vst [vmem:[%s1098_s9] sm:$0xff] %v528_v10  ;;  %v505_v13 = vadd.f32 %v504_v11, %v384_v5 }
 0x14a   : > { %v475_v14 = vpop.f32.mrf.mxu2 }
 0x14b   : > { %v529_v15 = vmax.f32 %v505_v13, 0.0  ;;  %v476_v16 = vadd.f32 %v475_v14, %v404_v12 }
 0x14c   : > { %v466_v17 = vpop.f32.mrf.mxu0 }
 0x14d   : > { %545 = vst [vmem:[%s1098_s9 + $0x8] sm:$0xff] %v529_v15  ;;  %v467_v18 = vadd.f32 %v466_v17, %v389_v6  ;;  %v536_v19 = vmax.f32 %v476_v16, 0.0 }
 0x14e   : > { %v516_v20 = vpop.f32.mrf.mxu3 }
 0x14f   : > { %v530_v21 = vmax.f32 %v467_v18, 0.0  ;;  %552 = vst [vmem:[%s1098_s9 + $0x40] sm:$0xff] %v536_v19  ;;  %v517_v22 = vadd.f32 %v516_v20, %v404_v12 }
 0x150   : > { %v507_v23 = vpop.f32.mrf.mxu1 }
 0x151   : > { %546 = vst [vmem:[%s1098_s9 + $0x10] sm:$0xff] %v530_v21  ;;  %v537_v25 = vmax.f32 %v517_v22, 0.0  ;;  %v508_v26 = vadd.f32 %v507_v23, %v389_v6 }
 0x152   : > { %v478_v27 = vpop.f32.mrf.mxu2 }
 0x153   : > { %553 = vst [vmem:[%s1098_s9 + $0x48] sm:$0xff] %v537_v25  ;;  %v531_v28 = vmax.f32 %v508_v26, 0.0  ;;  %v479_v29 = vadd.f32 %v478_v27, %v409_v24 }
 0x154   : > { %v469_v30 = vpop.f32.mrf.mxu0 }
 0x155   : > { %547 = vst [vmem:[%s1098_s9 + $0x18] sm:$0xff] %v531_v28  ;;  %v538_v32 = vmax.f32 %v479_v29, 0.0  ;;  %v470_v33 = vadd.f32 %v469_v30, %v394_v31 }
 0x156   : > { %v519_v34 = vpop.f32.mrf.mxu3 }
 0x157   : > { %554 = vst [vmem:[%s1098_s9 + $0x50] sm:$0xff] %v538_v32  ;;  %v532_v35 = vmax.f32 %v470_v33, 0.0  ;;  %v520_v36 = vadd.f32 %v519_v34, %v409_v24 }
 0x158   : > { %v510_v37 = vpop.f32.mrf.mxu1 }
 0x159   : > { %548 = vst [vmem:[%s1098_s9 + $0x20] sm:$0xff] %v532_v35  ;;  %v539_v38 = vmax.f32 %v520_v36, 0.0  ;;  %v511_v39 = vadd.f32 %v510_v37, %v394_v31 }
 0x15a   : > { %v481_v41 = vpop.f32.mrf.mxu2 }
 0x15b   : > { %555 = vst [vmem:[%s1098_s9 + $0x58] sm:$0xff] %v539_v38  ;;  %v533_v42 = vmax.f32 %v511_v39, 0.0  ;;  %v482_v43 = vadd.f32 %v481_v41, %v414_v40 }
 0x15c   : > { %v472_v44 = vpop.f32.mrf.mxu0 }
 0x15d   : > { %549 = vst [vmem:[%s1098_s9 + $0x28] sm:$0xff] %v533_v42  ;;  %v540_v45 = vmax.f32 %v482_v43, 0.0  ;;  %v473_v46 = vadd.f32 %v472_v44, %v399_v9 }
 0x15e   : > { %v522_v47 = vpop.f32.mrf.mxu3 }
 0x15f   : > { %556 = vst [vmem:[%s1098_s9 + $0x60] sm:$0xff] %v540_v45  ;;  %v534_v48 = vmax.f32 %v473_v46, 0.0  ;;  %v523_v49 = vadd.f32 %v522_v47, %v414_v40 }
 0x160   : > { %v513_v50 = vpop.f32.mrf.mxu1 }
 0x161   : > { %550 = vst [vmem:[%s1098_s9 + $0x30] sm:$0xff] %v534_v48  ;;  %v541_v51 = vmax.f32 %v523_v49, 0.0  ;;  %v514_v52 = vadd.f32 %v513_v50, %v399_v9 }
 0x162   : > { %v484_v54 = vpop.f32.mrf.mxu2 }
 0x163   : > { %557 = vst [vmem:[%s1098_s9 + $0x68] sm:$0xff] %v541_v51  ;;  %v535_v55 = vmax.f32 %v514_v52, 0.0  ;;  %v485_v56 = vadd.f32 %v484_v54, %v419_v53 }
 0x165   : > { %551 = vst [vmem:[%s1098_s9 + $0x38] sm:$0xff] %v535_v55  ;;  %v542_v57 = vmax.f32 %v485_v56, 0.0 }
 0x166   : > { %v525_v58 = vpop.f32.mrf.mxu3 }
 0x167   : > { %558 = vst [vmem:[%s1098_s9 + $0x70] sm:$0xff] %v542_v57  ;;  %v526_v59 = vadd.f32 %v525_v58, %v419_v53 }
 0x169   : > { %v543_v60 = vmax.f32 %v526_v59, 0.0 }
 0x16b   : > { %559 = vst [vmem:[%s1098_s9 + $0x78] sm:$0xff] %v543_v60 }
 0x16c   : > { %856 = shalt.err (!%p853_p7)
}
 0x16d   : > { %s906_s25 = smov 256   ;;  %s907_s22 = smov 512  }
 0x16e   : > { %s908_s7 = smov 16  }
 0x16f   : > { %700 = dma.vmem_to_hbm [thread:$0]  (%p975_p11), %s574_s20, 2048, %s576_s16, %s561_s26, %s906_s25, %s907_s22, %s908_s7  }
 0x170 PF: > { %s590_s8 = sand.u32 1, %s883_s12   ;;  %p707_p8 = pnand %p651_p9, %p979_p12 }
 0x171   : > { %s591_s9 = scalar_lea.sflag [#allocation5], %s590_s8 }
 0x172   : > { %p708_p10 = pneg %p707_p8 }
 0x174   : > { %878 = dma.done.wait (%p708_p10), %s591_s9, 2048  }
 0x175   : > { %880 = vsyncadd (%p708_p10), %s591_s9, 4294965248  ;;  %p16_p0 = scmp.ge.s32.totalorder %s954_s18, 4   ;;  %s1158_s12 = smov %s887_s13 }
 0x176   : > { %s1159_s13 = smov %s891_s14  ;;  %s1160_s14 = smov %s966_s21 }
 0x177   : > { %s1161_s15 = smov %s954_s18  ;;  %18 = sbr.rel (!%p16_p0) target bundleno = 5 (0x5), region = 77 }
 0x17c   :  { %597 = vsyncpa [#allocation4], 1 }
 0x17d   :  { %599 = vsyncpa [#allocation4 + $0x1], 1 }
 0x17e   :  { %600 = vsyncpa [#allocation5], 1 }
 0x17f   :  { %602 = vsyncpa [#allocation5 + $0x1], 1 }

</bundles_post_ra>
